<compile_context>
chip_gen: v6e
topology: v6e:2x2x1
jax: 0.10.0
libtpu: 0.0.40
codegen_flags: <defaults>
</compile_context>

<pallas_src>
import functools

import jax
import jax.numpy as jnp
from jax.experimental import pallas as pl
from jax.experimental.pallas import tpu as pltpu


def _round_up(x, m):
    return ((x + m - 1) // m) * m


def _vmem_capacity_bytes():
    try:
        return int(pltpu.get_tpu_info().vmem_capacity_bytes)
    except Exception:
        return 64 * 1024 * 1024  # conservative default (v7x per-TC)


# ----------------------------------------------------------------------------
# Fused MLP kernel: all layers unrolled in one body, activations stay on-chip.
# refs layout: (x, w0, b0, w1, b1, ..., w{L-1}, b{L-1}, out, hidden)
# Each weight is padded to its own (FPin_i, FPout_i); FPout_i == FPin_{i+1}.
# ----------------------------------------------------------------------------
def _bae_fused_kernel(*refs, n_layers, n_enc, acts):
    x_ref = refs[0]
    w_refs = refs[1:1 + 2 * n_layers:2]
    b_refs = refs[2:1 + 2 * n_layers:2]
    out_ref = refs[1 + 2 * n_layers]
    hid_ref = refs[2 + 2 * n_layers]

    h = x_ref[...]                                             # (TB, FP0) f32
    for i in range(n_layers):                                  # static unroll
        y = jnp.dot(h.astype(jnp.bfloat16), w_refs[i][...],    # bf16 MXU
                    preferred_element_type=jnp.float32)        # f32 accumulate
        y = y + b_refs[i][...]                                  # f32 bias bcast
        if acts[i] == "relu":
            h = jnp.maximum(y, 0.0)
        else:  # "sigmoid"
            h = jax.nn.sigmoid(y)                               # f32 EUP
        if i == n_enc - 1:                                      # bottleneck
            hid_ref[...] = h.astype(hid_ref.dtype)
    out_ref[...] = h.astype(out_ref.dtype)


# ----------------------------------------------------------------------------
# One-time parameter prep (pad + bf16 cast) — NOT in the per-call hot path.
# ----------------------------------------------------------------------------
def prepare_bae_params(enc_params, dec_params):
    params = list(enc_params) + list(dec_params)
    n_enc = len(enc_params)
    acts = tuple(p[2] for p in params)
    fan_ins = [p[0].shape[0] for p in params]
    fan_outs = [p[0].shape[1] for p in params]
    for i in range(len(params) - 1):
        assert fan_outs[i] == fan_ins[i + 1], "consecutive layer size mismatch"
    fpi = tuple(_round_up(f, 128) for f in fan_ins)
    fpo = tuple(_round_up(f, 128) for f in fan_outs)

    flat = []
    for (w_t, b, _), pi, po in zip(params, fpi, fpo):
        # Zero padding keeps valid output columns exact: padded activation
        # lanes (0 after ReLU, 0.5 after sigmoid) only ever multiply zero
        # weight rows of the next layer's padded fan_in region.
        wp = (jnp.zeros((pi, po), jnp.bfloat16)
              .at[:w_t.shape[0], :w_t.shape[1]].set(w_t.astype(jnp.bfloat16)))
        bp = jnp.zeros((1, po), jnp.float32).at[0, :b.shape[0]].set(b)
        flat.append(wp)
        flat.append(bp)

    meta = dict(
        n_layers=len(params), n_enc=n_enc, acts=acts,
        in_size=fan_ins[0], hidden_size=fan_outs[n_enc - 1],
        out_size=fan_outs[-1], fpi=fpi, fpo=fpo,
    )
    return flat, meta


# ----------------------------------------------------------------------------
# Forward wrapper: pad x, launch one fused pallas_call, slice valid region.
# ----------------------------------------------------------------------------
def bae_forward(x, flat_params, meta):
    """Equivalent of bae.forward: returns (out, hidden, hidden)."""
    n_layers = meta["n_layers"]
    n_enc = meta["n_enc"]
    fpi, fpo = meta["fpi"], meta["fpo"]
    B, Fin = x.shape
    assert Fin == meta["in_size"]

    vmem_cap = _vmem_capacity_bytes()
    tb_cap = 512 if vmem_cap <= 64 * 1024 * 1024 else 1024

    B_pad = _round_up(B, 8)
    TB = min(B_pad, tb_cap)
    if B_pad % TB:
        B_pad = _round_up(B_pad, TB)
    # If everything fits in one tile, split it so the "parallel" batch axis
    # can span both v7x TensorCores (tiny extra grid step on v5e/v6e).
    if B_pad // TB == 1 and B_pad >= 16:
        TB = _round_up(B_pad // 2, 8)
        if B_pad % TB:
            B_pad = _round_up(B_pad, TB)

    # Only x is padded per call; weights/biases were prepped once.
    x_p = jnp.zeros((B_pad, fpi[0]), jnp.float32).at[:B, :Fin].set(x)

    HP = fpo[n_enc - 1]   # narrow hidden pad
    OP = fpo[-1]          # output pad

    def est_vmem_bytes(weight_buffers):
        w = sum(pi * po * 2 for pi, po in zip(fpi, fpo)) * weight_buffers
        b = sum(8 * po * 4 for po in fpo) * weight_buffers   # bias pads to 8 sublanes
        io = 2 * TB * (fpi[0] + OP + HP) * 4                 # double-buffered x/out/hid
        act = 4 * TB * max(fpo) * 4                          # working activations slack
        return w + b + io + act

    kernel = functools.partial(
        _bae_fused_kernel, n_layers=n_layers, n_enc=n_enc, acts=meta["acts"]
    )

    def run(single_buffer_weights):
        wbuf = 1 if single_buffer_weights else 2
        vmem_limit = int(min(max(est_vmem_bytes(wbuf) + (8 << 20), 32 << 20),
                             int(vmem_cap * 0.75)))
        in_specs = [pl.BlockSpec((TB, fpi[0]), lambda i: (i, 0))]
        for pi, po in zip(fpi, fpo):
            if single_buffer_weights:
                in_specs.append(pl.BlockSpec((pi, po), lambda i: (0, 0),
                                             pipeline_mode=pl.Buffered(1)))
                in_specs.append(pl.BlockSpec((1, po), lambda i: (0, 0),
                                             pipeline_mode=pl.Buffered(1)))
            else:
                in_specs.append(pl.BlockSpec((pi, po), lambda i: (0, 0)))
                in_specs.append(pl.BlockSpec((1, po), lambda i: (0, 0)))
        return pl.pallas_call(
            kernel,
            grid=(B_pad // TB,),
            in_specs=in_specs,
            out_specs=(
                pl.BlockSpec((TB, OP), lambda i: (i, 0)),
                pl.BlockSpec((TB, HP), lambda i: (i, 0)),
            ),
            out_shape=(
                jax.ShapeDtypeStruct((B_pad, OP), jnp.float32),
                jax.ShapeDtypeStruct((B_pad, HP), jnp.float32),
            ),
            compiler_params=pltpu.CompilerParams(
                dimension_semantics=("parallel",),
                vmem_limit_bytes=vmem_limit,
            ),
        )(x_p, *flat_params)

    try:
        out_p, hid_p = run(True)        # single-buffered grid-invariant weights
    except Exception:
        out_p, hid_p = run(False)       # fallback: default double-buffering

    out = out_p[:B, :meta["out_size"]]
    hidden = hid_p[:B, :meta["hidden_size"]]
    return out, hidden, hidden


# ----------------------------------------------------------------------------
# Parameter init (deterministic, mimics nn.Linear default uniform init)
# ----------------------------------------------------------------------------
def init_linear(key, fan_in, fan_out):
    k_w, k_b = jax.random.split(key)
    bound = 1.0 / (fan_in ** 0.5)
    # stored directly as (Fin, Fout), i.e. already-transposed PyTorch layout
    w_t = jax.random.uniform(
        k_w, (fan_in, fan_out), jnp.float32, minval=-bound, maxval=bound
    )
    b = jax.random.uniform(
        k_b, (fan_out,), jnp.float32, minval=-bound, maxval=bound
    )
    return w_t, b


def build_bae_params(key, input_size, e_hidden_size, d_hidden_size):
    """Replicates bae.__init__ layer structure."""
    enc = []
    size1 = input_size
    keys = jax.random.split(key, len(e_hidden_size) + len(d_hidden_size) + 1)
    ki = 0
    for hs in range(len(e_hidden_size)):
        act = "sigmoid" if hs == len(e_hidden_size) - 1 else "relu"
        w_t, b = init_linear(keys[ki], size1, e_hidden_size[hs])
        ki += 1
        enc.append((w_t, b, act))
        size1 = e_hidden_size[hs]

    dec = []
    for hs in range(len(d_hidden_size) - 1):
        w_t, b = init_linear(keys[ki], d_hidden_size[hs], d_hidden_size[hs + 1])
        ki += 1
        dec.append((w_t, b, "relu"))
    # final decoder layer back to input_size, with Sigmoid (both branches of
    # the original code end in Linear(d_hidden_size[-1], input_size)+Sigmoid)
    w_t, b = init_linear(keys[ki], d_hidden_size[-1], input_size)
    dec.append((w_t, b, "sigmoid"))
    return enc, dec


# ----------------------------------------------------------------------------
# Pure-JAX reference (f32) for correctness checking
# ----------------------------------------------------------------------------
def bae_reference(x, enc_params, dec_params):
    def apply(h, layers):
        for w_t, b, act in layers:
            h = h @ w_t + b
            h = jnp.maximum(h, 0.0) if act == "relu" else jax.nn.sigmoid(h)
        return h

    hidden = apply(x, enc_params)
    out = apply(hidden, dec_params)
    return out, hidden, hidden


# ----------------------------------------------------------------------------
if __name__ == "__main__":
    # small shapes consistent with the module: flat-vector input -> MLP
    batch = 4
    input_size = 64
    e_hidden_size = [32, 16]   # encoder hidden sizes (last = bottleneck)
    d_hidden_size = [16, 32]   # decoder hidden sizes (d[0] == e[-1])

    key = jax.random.PRNGKey(0)
    k_x, k_p = jax.random.split(key)
    x = jax.random.uniform(k_x, (batch, input_size), jnp.float32)

    enc_params, dec_params = build_bae_params(
        k_p, input_size, e_hidden_size, d_hidden_size
    )
    flat_params, meta = prepare_bae_params(enc_params, dec_params)

    out, hidden, hidden2 = bae_forward(x, flat_params, meta)
    jax.block_until_ready((out, hidden, hidden2))

    # shape / range sanity
    assert out.shape == (batch, input_size)
    assert hidden.shape == (batch, e_hidden_size[-1])
    assert jnp.all((out >= 0.0) & (out <= 1.0))       # sigmoid output range
    assert jnp.all((hidden >= 0.0) & (hidden <= 1.0))

    # numerical check against pure-JAX f32 reference
    # (bf16 matmul inputs with f32 accumulation -> loosened tolerance)
    out_ref, hid_ref, _ = bae_reference(x, enc_params, dec_params)
    assert jnp.allclose(out, out_ref, atol=2e-2, rtol=2e-2)
    assert jnp.allclose(hidden, hid_ref, atol=2e-2, rtol=2e-2)

    # TODO(synk): mem_update / ActFun (spiking path) are unused in forward()
    # and are intentionally not implemented as Pallas kernels.

    print("KERNEL_OK")
</pallas_src>

<mosaic_0001>
module attributes {stable_mosaic.version = 11 : i64} {
  func.func @_bae_fused_kernel(%arg0: i32, %arg1: memref<8x128xf32, #tpu.memory_space<vmem>>, %arg2: memref<128x128xbf16, #tpu.memory_space<vmem>>, %arg3: memref<1x128xf32, #tpu.memory_space<vmem>>, %arg4: memref<128x128xbf16, #tpu.memory_space<vmem>>, %arg5: memref<1x128xf32, #tpu.memory_space<vmem>>, %arg6: memref<128x128xbf16, #tpu.memory_space<vmem>>, %arg7: memref<1x128xf32, #tpu.memory_space<vmem>>, %arg8: memref<128x128xbf16, #tpu.memory_space<vmem>>, %arg9: memref<1x128xf32, #tpu.memory_space<vmem>>, %arg10: memref<8x128xf32, #tpu.memory_space<vmem>>, %arg11: memref<8x128xf32, #tpu.memory_space<vmem>>) attributes {dimension_semantics = [#tpu.dimension_semantics<parallel>], iteration_bounds = array<i64: 1>, scalar_prefetch = 0 : i64, scratch_operands = 0 : i64, tpu.core_type = #tpu.core_type<tc>, window_params = [{transform_indices = @transform_0, window_bounds = array<i64: 8, 128>}, {pipeline_mode = #tpu.pipeline_mode<synchronous>, transform_indices = @transform_1, window_bounds = array<i64: 128, 128>}, {pipeline_mode = #tpu.pipeline_mode<synchronous>, transform_indices = @transform_2, window_bounds = array<i64: 1, 128>}, {pipeline_mode = #tpu.pipeline_mode<synchronous>, transform_indices = @transform_3, window_bounds = array<i64: 128, 128>}, {pipeline_mode = #tpu.pipeline_mode<synchronous>, transform_indices = @transform_4, window_bounds = array<i64: 1, 128>}, {pipeline_mode = #tpu.pipeline_mode<synchronous>, transform_indices = @transform_5, window_bounds = array<i64: 128, 128>}, {pipeline_mode = #tpu.pipeline_mode<synchronous>, transform_indices = @transform_6, window_bounds = array<i64: 1, 128>}, {pipeline_mode = #tpu.pipeline_mode<synchronous>, transform_indices = @transform_7, window_bounds = array<i64: 128, 128>}, {pipeline_mode = #tpu.pipeline_mode<synchronous>, transform_indices = @transform_8, window_bounds = array<i64: 1, 128>}, {transform_indices = @transform_9, window_bounds = array<i64: 8, 128>}, {transform_indices = @transform_10, window_bounds = array<i64: 8, 128>}]} {
    %c0 = arith.constant 0 : index
    %c0_0 = arith.constant 0 : index
    %0 = vector.load %arg1[%c0, %c0_0] : memref<8x128xf32, #tpu.memory_space<vmem>>, vector<8x128xf32>
    %1 = arith.truncf %0 : vector<8x128xf32> to vector<8x128xbf16>
    %c0_1 = arith.constant 0 : index
    %c0_2 = arith.constant 0 : index
    %2 = vector.load %arg2[%c0_1, %c0_2] : memref<128x128xbf16, #tpu.memory_space<vmem>>, vector<128x128xbf16>
    %cst = arith.constant dense<0.000000e+00> : vector<8x128xf32>
    %3 = tpu.matmul %1, %2, %cst {dimension_numbers = #tpu.dot_dimension_numbers<[1], [0], [0], [1], [0, 0, 1, 1], [], []>} : vector<8x128xbf16>, vector<128x128xbf16>, vector<8x128xf32> -> vector<8x128xf32>
    %c0_3 = arith.constant 0 : index
    %c0_4 = arith.constant 0 : index
    %4 = vector.load %arg3[%c0_3, %c0_4] : memref<1x128xf32, #tpu.memory_space<vmem>>, vector<1x128xf32>
    %5 = vector.broadcast %4 : vector<1x128xf32> to vector<8x128xf32>
    %6 = arith.addf %3, %5 : vector<8x128xf32>
    %cst_5 = arith.constant 0.000000e+00 : f32
    %7 = vector.broadcast %cst_5 : f32 to vector<8x128xf32>
    %8 = arith.maximumf %6, %7 : vector<8x128xf32>
    %9 = arith.truncf %8 : vector<8x128xf32> to vector<8x128xbf16>
    %c0_6 = arith.constant 0 : index
    %c0_7 = arith.constant 0 : index
    %10 = vector.load %arg4[%c0_6, %c0_7] : memref<128x128xbf16, #tpu.memory_space<vmem>>, vector<128x128xbf16>
    %cst_8 = arith.constant dense<0.000000e+00> : vector<8x128xf32>
    %11 = tpu.matmul %9, %10, %cst_8 {dimension_numbers = #tpu.dot_dimension_numbers<[1], [0], [0], [1], [0, 0, 1, 1], [], []>} : vector<8x128xbf16>, vector<128x128xbf16>, vector<8x128xf32> -> vector<8x128xf32>
    %c0_9 = arith.constant 0 : index
    %c0_10 = arith.constant 0 : index
    %12 = vector.load %arg5[%c0_9, %c0_10] : memref<1x128xf32, #tpu.memory_space<vmem>>, vector<1x128xf32>
    %13 = vector.broadcast %12 : vector<1x128xf32> to vector<8x128xf32>
    %14 = arith.addf %11, %13 : vector<8x128xf32>
    %15 = arith.negf %14 : vector<8x128xf32>
    %16 = math.exp %15 : vector<8x128xf32>
    %cst_11 = arith.constant 1.000000e+00 : f32
    %17 = vector.broadcast %cst_11 : f32 to vector<8x128xf32>
    %18 = arith.addf %17, %16 : vector<8x128xf32>
    %19 = arith.divf %17, %18 : vector<8x128xf32>
    %c0_12 = arith.constant 0 : index
    %c0_13 = arith.constant 0 : index
    %20 = vector.load %arg11[%c0_12, %c0_13] : memref<8x128xf32, #tpu.memory_space<vmem>>, vector<8x128xf32>
    tpu.vector_store %arg11[%c0_12, %c0_13], %19 {strides = array<i32>} : memref<8x128xf32, #tpu.memory_space<vmem>>, vector<8x128xf32>,
    %21 = arith.truncf %19 : vector<8x128xf32> to vector<8x128xbf16>
    %c0_14 = arith.constant 0 : index
    %c0_15 = arith.constant 0 : index
    %22 = vector.load %arg6[%c0_14, %c0_15] : memref<128x128xbf16, #tpu.memory_space<vmem>>, vector<128x128xbf16>
    %cst_16 = arith.constant dense<0.000000e+00> : vector<8x128xf32>
    %23 = tpu.matmul %21, %22, %cst_16 {dimension_numbers = #tpu.dot_dimension_numbers<[1], [0], [0], [1], [0, 0, 1, 1], [], []>} : vector<8x128xbf16>, vector<128x128xbf16>, vector<8x128xf32> -> vector<8x128xf32>
    %c0_17 = arith.constant 0 : index
    %c0_18 = arith.constant 0 : index
    %24 = vector.load %arg7[%c0_17, %c0_18] : memref<1x128xf32, #tpu.memory_space<vmem>>, vector<1x128xf32>
    %25 = vector.broadcast %24 : vector<1x128xf32> to vector<8x128xf32>
    %26 = arith.addf %23, %25 : vector<8x128xf32>
    %cst_19 = arith.constant 0.000000e+00 : f32
    %27 = vector.broadcast %cst_19 : f32 to vector<8x128xf32>
    %28 = arith.maximumf %26, %27 : vector<8x128xf32>
    %29 = arith.truncf %28 : vector<8x128xf32> to vector<8x128xbf16>
    %c0_20 = arith.constant 0 : index
    %c0_21 = arith.constant 0 : index
    %30 = vector.load %arg8[%c0_20, %c0_21] : memref<128x128xbf16, #tpu.memory_space<vmem>>, vector<128x128xbf16>
    %cst_22 = arith.constant dense<0.000000e+00> : vector<8x128xf32>
    %31 = tpu.matmul %29, %30, %cst_22 {dimension_numbers = #tpu.dot_dimension_numbers<[1], [0], [0], [1], [0, 0, 1, 1], [], []>} : vector<8x128xbf16>, vector<128x128xbf16>, vector<8x128xf32> -> vector<8x128xf32>
    %c0_23 = arith.constant 0 : index
    %c0_24 = arith.constant 0 : index
    %32 = vector.load %arg9[%c0_23, %c0_24] : memref<1x128xf32, #tpu.memory_space<vmem>>, vector<1x128xf32>
    %33 = vector.broadcast %32 : vector<1x128xf32> to vector<8x128xf32>
    %34 = arith.addf %31, %33 : vector<8x128xf32>
    %35 = arith.negf %34 : vector<8x128xf32>
    %36 = math.exp %35 : vector<8x128xf32>
    %cst_25 = arith.constant 1.000000e+00 : f32
    %37 = vector.broadcast %cst_25 : f32 to vector<8x128xf32>
    %38 = arith.addf %37, %36 : vector<8x128xf32>
    %39 = arith.divf %37, %38 : vector<8x128xf32>
    %c0_26 = arith.constant 0 : index
    %c0_27 = arith.constant 0 : index
    %40 = vector.load %arg10[%c0_26, %c0_27] : memref<8x128xf32, #tpu.memory_space<vmem>>, vector<8x128xf32>
    tpu.vector_store %arg10[%c0_26, %c0_27], %39 {strides = array<i32>} : memref<8x128xf32, #tpu.memory_space<vmem>>, vector<8x128xf32>,
    return
  }
  func.func @transform_0(%arg0: i32) -> (i32, i32) {
    %c0_i32 = arith.constant 0 : i32
    %c0_i32_0 = arith.constant 0 : i32
    return %arg0, %c0_i32 : i32, i32
  }
  func.func @transform_1(%arg0: i32) -> (i32, i32) {
    %c0_i32 = arith.constant 0 : i32
    %c0_i32_0 = arith.constant 0 : i32
    %c0_i32_1 = arith.constant 0 : i32
    return %c0_i32, %c0_i32_0 : i32, i32
  }
  func.func @transform_2(%arg0: i32) -> (i32, i32) {
    %c0_i32 = arith.constant 0 : i32
    %c0_i32_0 = arith.constant 0 : i32
    %c0_i32_1 = arith.constant 0 : i32
    return %c0_i32, %c0_i32_0 : i32, i32
  }
  func.func @transform_3(%arg0: i32) -> (i32, i32) {
    %c0_i32 = arith.constant 0 : i32
    %c0_i32_0 = arith.constant 0 : i32
    %c0_i32_1 = arith.constant 0 : i32
    return %c0_i32, %c0_i32_0 : i32, i32
  }
  func.func @transform_4(%arg0: i32) -> (i32, i32) {
    %c0_i32 = arith.constant 0 : i32
    %c0_i32_0 = arith.constant 0 : i32
    %c0_i32_1 = arith.constant 0 : i32
    return %c0_i32, %c0_i32_0 : i32, i32
  }
  func.func @transform_5(%arg0: i32) -> (i32, i32) {
    %c0_i32 = arith.constant 0 : i32
    %c0_i32_0 = arith.constant 0 : i32
    %c0_i32_1 = arith.constant 0 : i32
    return %c0_i32, %c0_i32_0 : i32, i32
  }
  func.func @transform_6(%arg0: i32) -> (i32, i32) {
    %c0_i32 = arith.constant 0 : i32
    %c0_i32_0 = arith.constant 0 : i32
    %c0_i32_1 = arith.constant 0 : i32
    return %c0_i32, %c0_i32_0 : i32, i32
  }
  func.func @transform_7(%arg0: i32) -> (i32, i32) {
    %c0_i32 = arith.constant 0 : i32
    %c0_i32_0 = arith.constant 0 : i32
    %c0_i32_1 = arith.constant 0 : i32
    return %c0_i32, %c0_i32_0 : i32, i32
  }
  func.func @transform_8(%arg0: i32) -> (i32, i32) {
    %c0_i32 = arith.constant 0 : i32
    %c0_i32_0 = arith.constant 0 : i32
    %c0_i32_1 = arith.constant 0 : i32
    return %c0_i32, %c0_i32_0 : i32, i32
  }
  func.func @transform_9(%arg0: i32) -> (i32, i32) {
    %c0_i32 = arith.constant 0 : i32
    %c0_i32_0 = arith.constant 0 : i32
    return %arg0, %c0_i32 : i32, i32
  }
  func.func @transform_10(%arg0: i32) -> (i32, i32) {
    %c0_i32 = arith.constant 0 : i32
    %c0_i32_0 = arith.constant 0 : i32
    return %arg0, %c0_i32 : i32, i32
  }
}

module attributes {stable_mosaic.version = 11 : i64} {
  func.func @_bae_fused_kernel(%arg0: i32, %arg1: memref<8x128xf32, #tpu.memory_space<vmem>>, %arg2: memref<128x128xbf16, #tpu.memory_space<vmem>>, %arg3: memref<1x128xf32, #tpu.memory_space<vmem>>, %arg4: memref<128x128xbf16, #tpu.memory_space<vmem>>, %arg5: memref<1x128xf32, #tpu.memory_space<vmem>>, %arg6: memref<128x128xbf16, #tpu.memory_space<vmem>>, %arg7: memref<1x128xf32, #tpu.memory_space<vmem>>, %arg8: memref<128x128xbf16, #tpu.memory_space<vmem>>, %arg9: memref<1x128xf32, #tpu.memory_space<vmem>>, %arg10: memref<8x128xf32, #tpu.memory_space<vmem>>, %arg11: memref<8x128xf32, #tpu.memory_space<vmem>>) attributes {dimension_semantics = [#tpu.dimension_semantics<parallel>], iteration_bounds = array<i64: 1>, scalar_prefetch = 0 : i64, scratch_operands = 0 : i64, tpu.core_type = #tpu.core_type<tc>, window_params = [{transform_indices = @transform_0, window_bounds = array<i64: 8, 128>}, {pipeline_mode = #tpu.pipeline_mode<synchronous>, transform_indices = @transform_1, window_bounds = array<i64: 128, 128>}, {pipeline_mode = #tpu.pipeline_mode<synchronous>, transform_indices = @transform_2, window_bounds = array<i64: 1, 128>}, {pipeline_mode = #tpu.pipeline_mode<synchronous>, transform_indices = @transform_3, window_bounds = array<i64: 128, 128>}, {pipeline_mode = #tpu.pipeline_mode<synchronous>, transform_indices = @transform_4, window_bounds = array<i64: 1, 128>}, {pipeline_mode = #tpu.pipeline_mode<synchronous>, transform_indices = @transform_5, window_bounds = array<i64: 128, 128>}, {pipeline_mode = #tpu.pipeline_mode<synchronous>, transform_indices = @transform_6, window_bounds = array<i64: 1, 128>}, {pipeline_mode = #tpu.pipeline_mode<synchronous>, transform_indices = @transform_7, window_bounds = array<i64: 128, 128>}, {pipeline_mode = #tpu.pipeline_mode<synchronous>, transform_indices = @transform_8, window_bounds = array<i64: 1, 128>}, {transform_indices = @transform_9, window_bounds = array<i64: 8, 128>}, {transform_indices = @transform_10, window_bounds = array<i64: 8, 128>}]} {
    %c0 = arith.constant 0 : index
    %c0_0 = arith.constant 0 : index
    %0 = vector.load %arg1[%c0, %c0_0] : memref<8x128xf32, #tpu.memory_space<vmem>>, vector<8x128xf32>
    %1 = arith.truncf %0 : vector<8x128xf32> to vector<8x128xbf16>
    %c0_1 = arith.constant 0 : index
    %c0_2 = arith.constant 0 : index
    %2 = vector.load %arg2[%c0_1, %c0_2] : memref<128x128xbf16, #tpu.memory_space<vmem>>, vector<128x128xbf16>
    %cst = arith.constant dense<0.000000e+00> : vector<8x128xf32>
    %3 = tpu.matmul %1, %2, %cst {dimension_numbers = #tpu.dot_dimension_numbers<[1], [0], [0], [1], [0, 0, 1, 1], [], []>} : vector<8x128xbf16>, vector<128x128xbf16>, vector<8x128xf32> -> vector<8x128xf32>
    %c0_3 = arith.constant 0 : index
    %c0_4 = arith.constant 0 : index
    %4 = vector.load %arg3[%c0_3, %c0_4] : memref<1x128xf32, #tpu.memory_space<vmem>>, vector<1x128xf32>
    %5 = vector.broadcast %4 : vector<1x128xf32> to vector<8x128xf32>
    %6 = arith.addf %3, %5 : vector<8x128xf32>
    %cst_5 = arith.constant 0.000000e+00 : f32
    %7 = vector.broadcast %cst_5 : f32 to vector<8x128xf32>
    %8 = arith.maximumf %6, %7 : vector<8x128xf32>
    %9 = arith.truncf %8 : vector<8x128xf32> to vector<8x128xbf16>
    %c0_6 = arith.constant 0 : index
    %c0_7 = arith.constant 0 : index
    %10 = vector.load %arg4[%c0_6, %c0_7] : memref<128x128xbf16, #tpu.memory_space<vmem>>, vector<128x128xbf16>
    %cst_8 = arith.constant dense<0.000000e+00> : vector<8x128xf32>
    %11 = tpu.matmul %9, %10, %cst_8 {dimension_numbers = #tpu.dot_dimension_numbers<[1], [0], [0], [1], [0, 0, 1, 1], [], []>} : vector<8x128xbf16>, vector<128x128xbf16>, vector<8x128xf32> -> vector<8x128xf32>
    %c0_9 = arith.constant 0 : index
    %c0_10 = arith.constant 0 : index
    %12 = vector.load %arg5[%c0_9, %c0_10] : memref<1x128xf32, #tpu.memory_space<vmem>>, vector<1x128xf32>
    %13 = vector.broadcast %12 : vector<1x128xf32> to vector<8x128xf32>
    %14 = arith.addf %11, %13 : vector<8x128xf32>
    %15 = arith.negf %14 : vector<8x128xf32>
    %16 = math.exp %15 : vector<8x128xf32>
    %cst_11 = arith.constant 1.000000e+00 : f32
    %17 = vector.broadcast %cst_11 : f32 to vector<8x128xf32>
    %18 = arith.addf %17, %16 : vector<8x128xf32>
    %19 = arith.divf %17, %18 : vector<8x128xf32>
    %c0_12 = arith.constant 0 : index
    %c0_13 = arith.constant 0 : index
    %20 = vector.load %arg11[%c0_12, %c0_13] : memref<8x128xf32, #tpu.memory_space<vmem>>, vector<8x128xf32>
    tpu.vector_store %arg11[%c0_12, %c0_13], %19 {strides = array<i32>} : memref<8x128xf32, #tpu.memory_space<vmem>>, vector<8x128xf32>,
    %21 = arith.truncf %19 : vector<8x128xf32> to vector<8x128xbf16>
    %c0_14 = arith.constant 0 : index
    %c0_15 = arith.constant 0 : index
    %22 = vector.load %arg6[%c0_14, %c0_15] : memref<128x128xbf16, #tpu.memory_space<vmem>>, vector<128x128xbf16>
    %cst_16 = arith.constant dense<0.000000e+00> : vector<8x128xf32>
    %23 = tpu.matmul %21, %22, %cst_16 {dimension_numbers = #tpu.dot_dimension_numbers<[1], [0], [0], [1], [0, 0, 1, 1], [], []>} : vector<8x128xbf16>, vector<128x128xbf16>, vector<8x128xf32> -> vector<8x128xf32>
    %c0_17 = arith.constant 0 : index
    %c0_18 = arith.constant 0 : index
    %24 = vector.load %arg7[%c0_17, %c0_18] : memref<1x128xf32, #tpu.memory_space<vmem>>, vector<1x128xf32>
    %25 = vector.broadcast %24 : vector<1x128xf32> to vector<8x128xf32>
    %26 = arith.addf %23, %25 : vector<8x128xf32>
    %cst_19 = arith.constant 0.000000e+00 : f32
    %27 = vector.broadcast %cst_19 : f32 to vector<8x128xf32>
    %28 = arith.maximumf %26, %27 : vector<8x128xf32>
    %29 = arith.truncf %28 : vector<8x128xf32> to vector<8x128xbf16>
    %c0_20 = arith.constant 0 : index
    %c0_21 = arith.constant 0 : index
    %30 = vector.load %arg8[%c0_20, %c0_21] : memref<128x128xbf16, #tpu.memory_space<vmem>>, vector<128x128xbf16>
    %cst_22 = arith.constant dense<0.000000e+00> : vector<8x128xf32>
    %31 = tpu.matmul %29, %30, %cst_22 {dimension_numbers = #tpu.dot_dimension_numbers<[1], [0], [0], [1], [0, 0, 1, 1], [], []>} : vector<8x128xbf16>, vector<128x128xbf16>, vector<8x128xf32> -> vector<8x128xf32>
    %c0_23 = arith.constant 0 : index
    %c0_24 = arith.constant 0 : index
    %32 = vector.load %arg9[%c0_23, %c0_24] : memref<1x128xf32, #tpu.memory_space<vmem>>, vector<1x128xf32>
    %33 = vector.broadcast %32 : vector<1x128xf32> to vector<8x128xf32>
    %34 = arith.addf %31, %33 : vector<8x128xf32>
    %35 = arith.negf %34 : vector<8x128xf32>
    %36 = math.exp %35 : vector<8x128xf32>
    %cst_25 = arith.constant 1.000000e+00 : f32
    %37 = vector.broadcast %cst_25 : f32 to vector<8x128xf32>
    %38 = arith.addf %37, %36 : vector<8x128xf32>
    %39 = arith.divf %37, %38 : vector<8x128xf32>
    %c0_26 = arith.constant 0 : index
    %c0_27 = arith.constant 0 : index
    %40 = vector.load %arg10[%c0_26, %c0_27] : memref<8x128xf32, #tpu.memory_space<vmem>>, vector<8x128xf32>
    tpu.vector_store %arg10[%c0_26, %c0_27], %39 {strides = array<i32>} : memref<8x128xf32, #tpu.memory_space<vmem>>, vector<8x128xf32>,
    return
  }
  func.func @transform_0(%arg0: i32) -> (i32, i32) {
    %c0_i32 = arith.constant 0 : i32
    %c0_i32_0 = arith.constant 0 : i32
    return %arg0, %c0_i32 : i32, i32
  }
  func.func @transform_1(%arg0: i32) -> (i32, i32) {
    %c0_i32 = arith.constant 0 : i32
    %c0_i32_0 = arith.constant 0 : i32
    %c0_i32_1 = arith.constant 0 : i32
    return %c0_i32, %c0_i32_0 : i32, i32
  }
  func.func @transform_2(%arg0: i32) -> (i32, i32) {
    %c0_i32 = arith.constant 0 : i32
    %c0_i32_0 = arith.constant 0 : i32
    %c0_i32_1 = arith.constant 0 : i32
    return %c0_i32, %c0_i32_0 : i32, i32
  }
  func.func @transform_3(%arg0: i32) -> (i32, i32) {
    %c0_i32 = arith.constant 0 : i32
    %c0_i32_0 = arith.constant 0 : i32
    %c0_i32_1 = arith.constant 0 : i32
    return %c0_i32, %c0_i32_0 : i32, i32
  }
  func.func @transform_4(%arg0: i32) -> (i32, i32) {
    %c0_i32 = arith.constant 0 : i32
    %c0_i32_0 = arith.constant 0 : i32
    %c0_i32_1 = arith.constant 0 : i32
    return %c0_i32, %c0_i32_0 : i32, i32
  }
  func.func @transform_5(%arg0: i32) -> (i32, i32) {
    %c0_i32 = arith.constant 0 : i32
    %c0_i32_0 = arith.constant 0 : i32
    %c0_i32_1 = arith.constant 0 : i32
    return %c0_i32, %c0_i32_0 : i32, i32
  }
  func.func @transform_6(%arg0: i32) -> (i32, i32) {
    %c0_i32 = arith.constant 0 : i32
    %c0_i32_0 = arith.constant 0 : i32
    %c0_i32_1 = arith.constant 0 : i32
    return %c0_i32, %c0_i32_0 : i32, i32
  }
  func.func @transform_7(%arg0: i32) -> (i32, i32) {
    %c0_i32 = arith.constant 0 : i32
    %c0_i32_0 = arith.constant 0 : i32
    %c0_i32_1 = arith.constant 0 : i32
    return %c0_i32, %c0_i32_0 : i32, i32
  }
  func.func @transform_8(%arg0: i32) -> (i32, i32) {
    %c0_i32 = arith.constant 0 : i32
    %c0_i32_0 = arith.constant 0 : i32
    %c0_i32_1 = arith.constant 0 : i32
    return %c0_i32, %c0_i32_0 : i32, i32
  }
  func.func @transform_9(%arg0: i32) -> (i32, i32) {
    %c0_i32 = arith.constant 0 : i32
    %c0_i32_0 = arith.constant 0 : i32
    return %arg0, %c0_i32 : i32, i32
  }
  func.func @transform_10(%arg0: i32) -> (i32, i32) {
    %c0_i32 = arith.constant 0 : i32
    %c0_i32_0 = arith.constant 0 : i32
    return %arg0, %c0_i32 : i32, i32
  }
}

</mosaic_0001>

<bundles_post_ra>
// kernel: tpu_custom_call.1
= control target key start
LH: loop header
LB: loop body
LE: loop exit
PB: predicated region body
PF: predicated region fallthrough
CT: control target
= control target key end

     0   :  { %16 = vsyncpa [#allocation3], 0  ;;  %s1105_s0 = inlined_call_operand.hbm [shape: f32[8,128], index: 0, kind: input, shape index: {}]   ;;  %s1106_s1 = inlined_call_operand.hbm [shape: bf16[128,128], index: 1, kind: input, shape index: {}]   ;;  %s1107_s2 = inlined_call_operand.vmem [shape: f32[1,128], index: 2, kind: input, shape index: {}]   ;;  %s1108_s3 = inlined_call_operand.hbm [shape: bf16[128,128], index: 3, kind: input, shape index: {}]   ;;  %s1109_s4 = inlined_call_operand.vmem [shape: f32[1,128], index: 4, kind: input, shape index: {}]   ;;  %s1110_s5 = inlined_call_operand.hbm [shape: bf16[128,128], index: 5, kind: input, shape index: {}]   ;;  %s1111_s6 = inlined_call_operand.vmem [shape: f32[1,128], index: 6, kind: input, shape index: {}]   ;;  %s1112_s7 = inlined_call_operand.hbm [shape: bf16[128,128], index: 7, kind: input, shape index: {}]   ;;  %s1113_s8 = inlined_call_operand.vmem [shape: f32[1,128], index: 8, kind: input, shape index: {}]   ;;  %s1114_s9 = inlined_call_operand.hbm [shape: f32[8,128], index: 9, kind: output, shape index: {0}]   ;;  %s1115_s10 = inlined_call_operand.hbm [shape: f32[8,128], index: 10, kind: output, shape index: {1}]  }
   0x1   :  { %17 = vsyncpa [#allocation6], 0 }
   0x2   :  { %18 = vsyncpa [#allocation9], 0 }
   0x3   :  { %19 = vsyncpa [#allocation4], 0 }
   0x4   :  { %20 = vsyncpa [#allocation13], 0  ;;  %s954_s13 = smov [#allocation5]  }
   0x5   :  { %s36_s14 = sshll.u32 %s954_s13, 4  ;;  %s37_s14 = int_to_ptr.vmem [resolvable:$true] %s36_s14 }
   0x6   :  { %s812_s15 = scalar_lea.vmem %s37_s14, 1024  ;;  %p817_p1 = scmp.lt.s32.totalorder %s37_s14, %s37_s14 }
   0x7   :  { %p813_p0 = scmp.ne.s32.totalorder %s37_s14, %s812_s15  ;;  %p818_p2 = scmp.lt.s32.totalorder %s812_s15, %s812_s15 }
   0x9   :  { %p819_p3 = por %p818_p2, %p817_p1 }
   0xb   :  { %p820_p4 = pnand %p819_p3, %p813_p0 }
   0xd   :  { %823 = shalt.err (!%p820_p4)
}
   0xe   :  { %s955_s16 = smov 64   ;;  %s956_s17 = smov 4  }
   0xf   :  { %42 = dma.hbm_to_vmem [thread:$0]  %s1106_s1, 1024, %s37_s14, [#allocation6], %s955_s16, %s955_s16, %s956_s17  }
  0x10   :  { %s957_s20 = smov [#allocation8]   ;;  %s958_s22 = smov [#allocation2]  }
  0x11   :  { %s64_s21 = sshll.u32 %s957_s20, 4  ;;  %s27_s23 = sshll.u32 %s958_s22, 4  ;;  %s65_s21 = int_to_ptr.vmem [resolvable:$true] %s64_s21  ;;  %s28_s23 = int_to_ptr.vmem [resolvable:$true] %s27_s23 }
  0x12   :  { %s832_s24 = scalar_lea.vmem %s65_s21, 1024  ;;  %p837_p6 = scmp.lt.s32.totalorder %s65_s21, %s65_s21 }
  0x13   :  { %p833_p5 = scmp.ne.s32.totalorder %s65_s21, %s832_s24  ;;  %p838_p7 = scmp.lt.s32.totalorder %s832_s24, %s832_s24 }
  0x15   :  { %p839_p8 = por %p838_p7, %p837_p6 }
  0x17   :  { %p840_p9 = pnand %p839_p8, %p833_p5 }
  0x19   :  { %843 = shalt.err (!%p840_p9)
}
  0x1a   :  { %70 = dma.hbm_to_vmem [thread:$0]  %s1110_s5, 1024, %s65_s21, [#allocation9], %s955_s16, %s955_s16, %s956_s17  }
  0x1b   :  { %s852_s1 = scalar_lea.vmem %s28_s23, 128  ;;  %p857_p11 = scmp.lt.s32.totalorder %s28_s23, %s28_s23 }
  0x1c   :  { %p853_p10 = scmp.ne.s32.totalorder %s28_s23, %s852_s1  ;;  %p858_p12 = scmp.lt.s32.totalorder %s852_s1, %s852_s1 }
  0x1e   :  { %p859_p13 = por %p858_p12, %p857_p11 }
  0x20   :  { %p860_p0 = pnand %p859_p13, %p853_p10 }
  0x22   :  { %863 = shalt.err (!%p860_p0)
}
  0x23   :  { %30 = dma.hbm_to_vmem [thread:$0]  %s1105_s0, 128, %s28_s23, [#allocation3]  }
  0x24   :  { %s959_s29 = smov [#allocation7]   ;;  %s960_s11 = smov [#allocation10]  }
  0x25   :  { %s50_s30 = sshll.u32 %s959_s29, 4  ;;  %s78_s12 = sshll.u32 %s960_s11, 4  ;;  %s51_s30 = int_to_ptr.vmem [resolvable:$true] %s50_s30  ;;  %s79_s12 = int_to_ptr.vmem [resolvable:$true] %s78_s12 }
  0x26   :  { %s872_s13 = scalar_lea.vmem %s51_s30, 1024  ;;  %p877_p2 = scmp.lt.s32.totalorder %s51_s30, %s51_s30 }
  0x27   :  { %p873_p1 = scmp.ne.s32.totalorder %s51_s30, %s872_s13  ;;  %p878_p3 = scmp.lt.s32.totalorder %s872_s13, %s872_s13 }
  0x29   :  { %p879_p4 = por %p878_p3, %p877_p2 }
  0x2b   :  { %p880_p5 = pnand %p879_p4, %p873_p1 }
  0x2d   :  { %883 = shalt.err (!%p880_p5)
}
  0x2e   :  { %56 = dma.hbm_to_vmem [thread:$0]  %s1108_s3, 1024, %s51_s30, [#allocation6], %s955_s16, %s955_s16, %s956_s17  }
  0x2f   :  { %s892_s0 = scalar_lea.vmem %s79_s12, 1024  ;;  %p897_p7 = scmp.lt.s32.totalorder %s79_s12, %s79_s12 }
  0x30   :  { %p893_p6 = scmp.ne.s32.totalorder %s79_s12, %s892_s0  ;;  %p898_p8 = scmp.lt.s32.totalorder %s892_s0, %s892_s0 }
  0x32   :  { %p899_p9 = por %p898_p8, %p897_p7 }
  0x34   :  { %p900_p10 = pnand %p899_p9, %p893_p6 }
  0x36   :  { %903 = shalt.err (!%p900_p10)
}
  0x37   :  { %84 = dma.hbm_to_vmem [thread:$0]  %s1112_s7, 1024, %s79_s12, [#allocation9], %s955_s16, %s955_s16, %s956_s17  }
  0x38   :  { %944 = dma.done.wait [#allocation3], 128  }
  0x39   :  { %945 = vsyncadd [#allocation3], 4294967168 }
  0x3a   :  { %946 = dma.done.wait [#allocation6], 2048  }
  0x3b   :  { %947 = vsyncadd [#allocation6], 4294965248 }
  0x3c   :  { %948 = dma.done.wait [#allocation9], 2048  }
  0x3d   :  { %949 = vsyncadd [#allocation9], 4294965248  ;;  %v961_v0 = vmov 0.0   ;;  %vm962_vm0 = vmmov 0   ;;  %v764_v1 = vld [vmem:[#allocation5 + $0x38] sm:$0xff]   ;;  %v765_v2 = vld [vmem:[#allocation5 + $0x30] sm:$0xff]  }
  0x3e   :  { %673 = vmatprep.subr.bf16.mxu0 %v961_v0  ;;  %689 = vmatprep.mubr.msk.bf16.mxu0 %vm962_vm0, %v961_v0  ;;  %v766_v3 = vld [vmem:[#allocation5 + $0x28] sm:$0xff]   ;;  %v772_v4 = vld [vmem:[#allocation7 + $0x38] sm:$0xff]   ;;  %v767_v5 = vld [vmem:[#allocation5 + $0x20] sm:$0xff]   ;;  %s963_s19 = smov [#allocation12]  }
  0x3f   :  { %693 = vmatprep.subr.bf16.mxu1 %v961_v0  ;;  %709 = vmatprep.mubr.msk.bf16.mxu1 %vm962_vm0, %v961_v0  ;;  %v773_v6 = vld [vmem:[#allocation7 + $0x30] sm:$0xff]   ;;  %v768_v7 = vld [vmem:[#allocation5 + $0x18] sm:$0xff]   ;;  %v774_v8 = vld [vmem:[#allocation7 + $0x28] sm:$0xff]   ;;  %s584_s20 = sshll.u32 %s963_s19, 4  ;;  %s585_s20 = int_to_ptr.vmem [resolvable:$true] %s584_s20 }
  0x40   :  { %674 = vmatpush3.bf16.msra.mxu0 %v764_v1  ;;  %694 = vmatpush3.bf16.msra.mxu1 %v772_v4  ;;  %v769_v9 = vld [vmem:[#allocation5 + $0x10] sm:$0xff]   ;;  %v775_v10 = vld [vmem:[#allocation7 + $0x20] sm:$0xff]   ;;  %v770_v11 = vld [vmem:[#allocation5 + $0x8] sm:$0xff]   ;;  %s904_s21 = scalar_lea.vmem %s585_s20, 128  ;;  %p909_p12 = scmp.lt.s32.totalorder %s585_s20, %s585_s20 }
  0x41   :  { %675 = vmatprep.subr.bf16.mxu0 %v961_v0  ;;  %695 = vmatprep.subr.bf16.mxu1 %v961_v0  ;;  %v776_v12 = vld [vmem:[#allocation7 + $0x18] sm:$0xff]   ;;  %v771_v13 = vld [vmem:[#allocation5] sm:$0xff]   ;;  %v777_v15 = vld [vmem:[#allocation7 + $0x10] sm:$0xff]   ;;  %p905_p11 = scmp.ne.s32.totalorder %s585_s20, %s904_s21  ;;  %p910_p13 = scmp.lt.s32.totalorder %s904_s21, %s904_s21 }
  0x42   :  { %v103_v14 = vld [vmem:[#allocation2] sm:$0xff]  ;;  %v778_v17 = vld [vmem:[#allocation7 + $0x8] sm:$0xff]   ;;  %v779_v18 = vld [vmem:[#allocation7] sm:$0xff]  }
  0x43   :  { %v104_v16 = vpack.c.bf16 %v103_v14, %v103_v14  ;;  %v599_v19 = vld [vmem:[%s1107_s2] ss:$0 sm:$0xff]  ;;  %v781_v28 = vld [vmem:[#allocation8 + $0x30] sm:$0xff]   ;;  %v782_v29 = vld [vmem:[#allocation8 + $0x28] sm:$0xff]   ;;  %p911_p0 = por %p910_p13, %p909_p12 }
  0x44   :  { %676 = vmatpush3.bf16.msra.mxu0 %v765_v2  ;;  %696 = vmatpush3.bf16.msra.mxu1 %v773_v6  ;;  %v780_v27 = vld [vmem:[#allocation8 + $0x38] sm:$0xff]   ;;  %v783_v30 = vld [vmem:[#allocation8 + $0x20] sm:$0xff]   ;;  %v785_v32 = vld [vmem:[#allocation8 + $0x10] sm:$0xff]  }
  0x45   :  { %677 = vmatprep.subr.bf16.mxu0 %v961_v0  ;;  %697 = vmatprep.subr.bf16.mxu1 %v961_v0  ;;  %v784_v31 = vld [vmem:[#allocation8 + $0x18] sm:$0xff]   ;;  %v786_v33 = vld [vmem:[#allocation8 + $0x8] sm:$0xff]   ;;  %v787_v34 = vld [vmem:[#allocation8] sm:$0xff]   ;;  %p912_p1 = pnand %p911_p0, %p905_p11 }
  0x46   :  { %v788_v35 = vld [vmem:[#allocation10 + $0x38] sm:$0xff]   ;;  %v789_v36 = vld [vmem:[#allocation10 + $0x30] sm:$0xff]   ;;  %v790_v37 = vld [vmem:[#allocation10 + $0x28] sm:$0xff]  }
  0x47   :  { %v791_v38 = vld [vmem:[#allocation10 + $0x20] sm:$0xff]   ;;  %v792_v39 = vld [vmem:[#allocation10 + $0x18] sm:$0xff]   ;;  %v793_v40 = vld [vmem:[#allocation10 + $0x10] sm:$0xff]  }
  0x48   :  { %678 = vmatpush3.bf16.msra.mxu0 %v766_v3  ;;  %698 = vmatpush3.bf16.msra.mxu1 %v774_v8  ;;  %v608_v41 = vld [vmem:[%s1109_s4] ss:$0 sm:$0xff]  ;;  %v794_v52 = vld [vmem:[#allocation10 + $0x8] sm:$0xff]   ;;  %v795_v53 = vld [vmem:[#allocation10] sm:$0xff]  }
  0x49   :  { %679 = vmatprep.subr.bf16.mxu0 %v961_v0  ;;  %699 = vmatprep.subr.bf16.mxu1 %v961_v0  ;;  %v618_v54 = vld [vmem:[%s1111_s6] ss:$0 sm:$0xff] }
  0x4c   :  { %680 = vmatpush3.bf16.msra.mxu0 %v767_v5  ;;  %700 = vmatpush3.bf16.msra.mxu1 %v775_v10 }
  0x4d   :  { %681 = vmatprep.subr.bf16.mxu0 %v961_v0  ;;  %701 = vmatprep.subr.bf16.mxu1 %v961_v0 }
  0x50   :  { %682 = vmatpush3.bf16.msra.mxu0 %v768_v7  ;;  %702 = vmatpush3.bf16.msra.mxu1 %v776_v12 }
  0x51   :  { %683 = vmatprep.subr.bf16.mxu0 %v961_v0  ;;  %703 = vmatprep.subr.bf16.mxu1 %v961_v0 }
  0x54   :  { %684 = vmatpush3.bf16.msra.mxu0 %v769_v9  ;;  %704 = vmatpush3.bf16.msra.mxu1 %v777_v15 }
  0x55   :  { %685 = vmatprep.subr.bf16.mxu0 %v961_v0  ;;  %705 = vmatprep.subr.bf16.mxu1 %v961_v0 }
  0x58   :  { %686 = vmatpush3.bf16.msra.mxu0 %v770_v11  ;;  %706 = vmatpush3.bf16.msra.mxu1 %v778_v17 }
  0x59   :  { %687 = vmatprep.subr.bf16.mxu0 %v961_v0  ;;  %707 = vmatprep.subr.bf16.mxu1 %v961_v0 }
  0x5c   :  { %688 = vmatpush3.bf16.msra.mxu0 %v771_v13  ;;  %708 = vmatpush3.bf16.msra.mxu1 %v779_v18 }
  0x5d   :  { %713 = vmatprep.subr.bf16.mxu0 %v961_v0  ;;  %733 = vmatprep.subr.bf16.mxu1 %v961_v0 }
  0x5f   :  { %690 = vmatmul.mubr.bf16.vlgmr.msra.gmra.mxu0 %v104_v16 }
  0x60   :  { %729 = vmatprep.mubr.msk.bf16.mxu0 %vm962_vm0, %v961_v0  ;;  %714 = vmatpush3.bf16.msra.mxu0 %v780_v27 }
  0x61   :  { %715 = vmatprep.subr.bf16.mxu0 %v961_v0 }
  0x64   :  { %716 = vmatpush3.bf16.msra.mxu0 %v781_v28 }
  0x65   :  { %717 = vmatprep.subr.bf16.mxu0 %v961_v0 }
  0x68   :  { %718 = vmatpush3.bf16.msra.mxu0 %v782_v29 }
  0x69   :  { %719 = vmatprep.subr.bf16.mxu0 %v961_v0 }
  0x6c   :  { %720 = vmatpush3.bf16.msra.mxu0 %v783_v30 }
  0x6d   :  { %721 = vmatprep.subr.bf16.mxu0 %v961_v0 }
  0x70   :  { %722 = vmatpush3.bf16.msra.mxu0 %v784_v31 }
  0x71   :  { %723 = vmatprep.subr.bf16.mxu0 %v961_v0 }
  0x74   :  { %724 = vmatpush3.bf16.msra.mxu0 %v785_v32 }
  0x75   :  { %725 = vmatprep.subr.bf16.mxu0 %v961_v0 }
  0x78   :  { %726 = vmatpush3.bf16.msra.mxu0 %v786_v33 }
  0x79   :  { %727 = vmatprep.subr.bf16.mxu0 %v961_v0 }
  0x7c   :  { %728 = vmatpush3.bf16.msra.mxu0 %v787_v34 }
 0x11f   :  { %v210_v20 = vpop.f32.mrf.mxu0 }
 0x120   :  { %v211_v21 = vadd.f32 %v599_v19, %v210_v20 }
 0x121   :  { %v691_v22 = vpop.f32.mrf.mxu0 }
 0x122   :  { %v216_v23 = vmax.f32 %v211_v21, 0.0 }
 0x123   :  { %v213_v24 = vpop.f32.mrf.mxu0 }
 0x124   :  { %v217_v25 = vpack.c.bf16 %v216_v23, %v216_v23 }
 0x125   :  { %v692_v26 = vpop.f32.mrf.mxu0 }
 0x126   :  { %710 = vmatmul.mubr.bf16.vlgmr.msra.gmra.mxu1 %v217_v25 }
 0x127   :  { %749 = vmatprep.mubr.msk.bf16.mxu1 %vm962_vm0, %v961_v0  ;;  %734 = vmatpush3.bf16.msra.mxu1 %v788_v35 }
 0x128   :  { %735 = vmatprep.subr.bf16.mxu1 %v961_v0 }
 0x12b   :  { %736 = vmatpush3.bf16.msra.mxu1 %v789_v36 }
 0x12c   :  { %737 = vmatprep.subr.bf16.mxu1 %v961_v0 }
 0x12f   :  { %738 = vmatpush3.bf16.msra.mxu1 %v790_v37 }
 0x130   :  { %739 = vmatprep.subr.bf16.mxu1 %v961_v0 }
 0x133   :  { %740 = vmatpush3.bf16.msra.mxu1 %v791_v38 }
 0x134   :  { %741 = vmatprep.subr.bf16.mxu1 %v961_v0 }
 0x137   :  { %742 = vmatpush3.bf16.msra.mxu1 %v792_v39 }
 0x138   :  { %743 = vmatprep.subr.bf16.mxu1 %v961_v0 }
 0x13b   :  { %744 = vmatpush3.bf16.msra.mxu1 %v793_v40 }
 0x13c   :  { %745 = vmatprep.subr.bf16.mxu1 %v961_v0 }
 0x13f   :  { %746 = vmatpush3.bf16.msra.mxu1 %v794_v52 }
 0x140   :  { %747 = vmatprep.subr.bf16.mxu1 %v961_v0 }
 0x143   :  { %748 = vmatpush3.bf16.msra.mxu1 %v795_v53 }
 0x1e6   :  { %v323_v42 = vpop.f32.mrf.mxu1 }
 0x1e7   :  { %v324_v43 = vadd.f32 %v608_v41, %v323_v42 }
 0x1e8   :  { %v711_v44 = vpop.f32.mrf.mxu1 }
 0x1e9   :  { %v617_v45 = vmul.f32 -1.442695, %v324_v43 }
 0x1ea   :  { %v326_v46 = vpop.f32.mrf.mxu1 }
 0x1eb   :  { %796 = vpow2.f32 %v617_v45 }
 0x1ec   :  { %v712_v47 = vpop.f32.mrf.mxu1 }
 0x1f8   :  { %v797_v48 = vpop.eup %796 }
 0x1f9   :  { %v332_v49 = vadd.f32 1.0, %v797_v48 }
 0x1fb   :  { %798 = vrcp.f32 %v332_v49 }
 0x208   :  { %v799_v50 = vpop.eup %798 }
 0x209   :  { %335 = vst [vmem:[#allocation12] sm:$0xff] %v799_v50  ;;  %v336_v51 = vpack.c.bf16 %v799_v50, %v799_v50 }
 0x20b   :  { %730 = vmatmul.mubr.bf16.vlgmr.msra.gmra.mxu0 %v336_v51 }
 0x2cb   :  { %v442_v55 = vpop.f32.mrf.mxu0 }
 0x2cc   :  { %v443_v56 = vadd.f32 %v618_v54, %v442_v55 }
 0x2cd   :  { %v731_v57 = vpop.f32.mrf.mxu0 }
 0x2ce   :  { %v448_v58 = vmax.f32 %v443_v56, 0.0 }
 0x2cf   :  { %v445_v59 = vpop.f32.mrf.mxu0 }
 0x2d0   :  { %v449_v60 = vpack.c.bf16 %v448_v58, %v448_v58 }
 0x2d1   :  { %v732_v61 = vpop.f32.mrf.mxu0 }
 0x2d2   :  { %750 = vmatmul.mubr.bf16.vlgmr.msra.gmra.mxu1 %v449_v60 }
 0x2d3   :  { %915 = shalt.err (!%p912_p1)
}
 0x2d4   :  { %587 = dma.vmem_to_hbm [thread:$0]  %s585_s20, 128, %s1115_s10, [#allocation13]   ;;  %v627_v62 = vld [vmem:[%s1113_s8] ss:$0 sm:$0xff] }
 0x2d5   :  { %s964_s25 = smov [#allocation11]  }
 0x2d6   :  { %s574_s26 = sshll.u32 %s964_s25, 4  ;;  %s575_s26 = int_to_ptr.vmem [resolvable:$true] %s574_s26 }
 0x2d7   :  { %s924_s10 = scalar_lea.vmem %s575_s26, 128  ;;  %p929_p3 = scmp.lt.s32.totalorder %s575_s26, %s575_s26 }
 0x2d8   :  { %p925_p2 = scmp.ne.s32.totalorder %s575_s26, %s924_s10  ;;  %p930_p4 = scmp.lt.s32.totalorder %s924_s10, %s924_s10 }
 0x2da   :  { %p931_p5 = por %p930_p4, %p929_p3 }
 0x2dc   :  { %p932_p6 = pnand %p931_p5, %p925_p2 }
 0x392   :  { %v555_v63 = vpop.f32.mrf.mxu1 }
 0x393   :  { %v556_v0 = vadd.f32 %v627_v62, %v555_v63 }
 0x394   :  { %v751_v1 = vpop.f32.mrf.mxu1 }
 0x395   :  { %v636_v2 = vmul.f32 -1.442695, %v556_v0 }
 0x396   :  { %v558_v3 = vpop.f32.mrf.mxu1 }
 0x397   :  { %800 = vpow2.f32 %v636_v2 }
 0x398   :  { %v752_v4 = vpop.f32.mrf.mxu1 }
 0x3a4   :  { %v801_v5 = vpop.eup %800 }
 0x3a5   :  { %v564_v6 = vadd.f32 1.0, %v801_v5 }
 0x3a7   :  { %802 = vrcp.f32 %v564_v6 }
 0x3b4   :  { %v803_v7 = vpop.eup %802 }
 0x3b5   :  { %567 = vst [vmem:[#allocation11] sm:$0xff] %v803_v7 }
 0x3b6   :  { %935 = shalt.err (!%p932_p6)
}
 0x3b7   :  { %577 = dma.vmem_to_hbm [thread:$0]  %s575_s26, 128, %s1114_s9, [#allocation4]  }
 0x3b8   :  { %950 = dma.done.wait [#allocation4], 128  }
 0x3b9   :  { %951 = vsyncadd [#allocation4], 4294967168 }
 0x3ba   :  { %952 = dma.done.wait [#allocation13], 128  }
 0x3bb   :  { %953 = vsyncadd [#allocation13], 4294967168 }
 0x3bc   :  { %594 = vsyncpa [#allocation3], 1 }
 0x3bd   :  { %595 = vsyncpa [#allocation6], 1 }
 0x3be   :  { %596 = vsyncpa [#allocation9], 1 }
 0x3bf   :  { %597 = vsyncpa [#allocation4], 1 }
 0x3c0   :  { %598 = vsyncpa [#allocation13], 1 }

// kernel: tpu_custom_call.1
= control target key start
LH: loop header
LB: loop body
LE: loop exit
PB: predicated region body
PF: predicated region fallthrough
CT: control target
= control target key end

     0   :  { %16 = vsyncpa [#allocation3], 0  ;;  %s1105_s0 = inlined_call_operand.hbm [shape: f32[8,128], index: 0, kind: input, shape index: {}]   ;;  %s1106_s1 = inlined_call_operand.hbm [shape: bf16[128,128], index: 1, kind: input, shape index: {}]   ;;  %s1107_s2 = inlined_call_operand.vmem [shape: f32[1,128], index: 2, kind: input, shape index: {}]   ;;  %s1108_s3 = inlined_call_operand.hbm [shape: bf16[128,128], index: 3, kind: input, shape index: {}]   ;;  %s1109_s4 = inlined_call_operand.vmem [shape: f32[1,128], index: 4, kind: input, shape index: {}]   ;;  %s1110_s5 = inlined_call_operand.hbm [shape: bf16[128,128], index: 5, kind: input, shape index: {}]   ;;  %s1111_s6 = inlined_call_operand.vmem [shape: f32[1,128], index: 6, kind: input, shape index: {}]   ;;  %s1112_s7 = inlined_call_operand.hbm [shape: bf16[128,128], index: 7, kind: input, shape index: {}]   ;;  %s1113_s8 = inlined_call_operand.vmem [shape: f32[1,128], index: 8, kind: input, shape index: {}]   ;;  %s1114_s9 = inlined_call_operand.hbm [shape: f32[8,128], index: 9, kind: output, shape index: {0}]   ;;  %s1115_s10 = inlined_call_operand.hbm [shape: f32[8,128], index: 10, kind: output, shape index: {1}]  }
   0x1   :  { %17 = vsyncpa [#allocation6], 0 }
   0x2   :  { %18 = vsyncpa [#allocation9], 0 }
   0x3   :  { %19 = vsyncpa [#allocation4], 0 }
   0x4   :  { %20 = vsyncpa [#allocation13], 0  ;;  %s954_s13 = smov [#allocation5]  }
   0x5   :  { %s36_s14 = sshll.u32 %s954_s13, 4  ;;  %s37_s14 = int_to_ptr.vmem [resolvable:$true] %s36_s14 }
   0x6   :  { %s812_s15 = scalar_lea.vmem %s37_s14, 1024  ;;  %p817_p1 = scmp.lt.s32.totalorder %s37_s14, %s37_s14 }
   0x7   :  { %p813_p0 = scmp.ne.s32.totalorder %s37_s14, %s812_s15  ;;  %p818_p2 = scmp.lt.s32.totalorder %s812_s15, %s812_s15 }
   0x9   :  { %p819_p3 = por %p818_p2, %p817_p1 }
   0xb   :  { %p820_p4 = pnand %p819_p3, %p813_p0 }
   0xd   :  { %823 = shalt.err (!%p820_p4)
}
   0xe   :  { %s955_s16 = smov 64   ;;  %s956_s17 = smov 4  }
   0xf   :  { %42 = dma.hbm_to_vmem [thread:$0]  %s1106_s1, 1024, %s37_s14, [#allocation6], %s955_s16, %s955_s16, %s956_s17  }
  0x10   :  { %s957_s20 = smov [#allocation8]   ;;  %s958_s22 = smov [#allocation2]  }
  0x11   :  { %s64_s21 = sshll.u32 %s957_s20, 4  ;;  %s27_s23 = sshll.u32 %s958_s22, 4  ;;  %s65_s21 = int_to_ptr.vmem [resolvable:$true] %s64_s21  ;;  %s28_s23 = int_to_ptr.vmem [resolvable:$true] %s27_s23 }
  0x12   :  { %s832_s24 = scalar_lea.vmem %s65_s21, 1024  ;;  %p837_p6 = scmp.lt.s32.totalorder %s65_s21, %s65_s21 }
  0x13   :  { %p833_p5 = scmp.ne.s32.totalorder %s65_s21, %s832_s24  ;;  %p838_p7 = scmp.lt.s32.totalorder %s832_s24, %s832_s24 }
  0x15   :  { %p839_p8 = por %p838_p7, %p837_p6 }
  0x17   :  { %p840_p9 = pnand %p839_p8, %p833_p5 }
  0x19   :  { %843 = shalt.err (!%p840_p9)
}
  0x1a   :  { %70 = dma.hbm_to_vmem [thread:$0]  %s1110_s5, 1024, %s65_s21, [#allocation9], %s955_s16, %s955_s16, %s956_s17  }
  0x1b   :  { %s852_s1 = scalar_lea.vmem %s28_s23, 128  ;;  %p857_p11 = scmp.lt.s32.totalorder %s28_s23, %s28_s23 }
  0x1c   :  { %p853_p10 = scmp.ne.s32.totalorder %s28_s23, %s852_s1  ;;  %p858_p12 = scmp.lt.s32.totalorder %s852_s1, %s852_s1 }
  0x1e   :  { %p859_p13 = por %p858_p12, %p857_p11 }
  0x20   :  { %p860_p0 = pnand %p859_p13, %p853_p10 }
  0x22   :  { %863 = shalt.err (!%p860_p0)
}
  0x23   :  { %30 = dma.hbm_to_vmem [thread:$0]  %s1105_s0, 128, %s28_s23, [#allocation3]  }
  0x24   :  { %s959_s29 = smov [#allocation7]   ;;  %s960_s11 = smov [#allocation10]  }
  0x25   :  { %s50_s30 = sshll.u32 %s959_s29, 4  ;;  %s78_s12 = sshll.u32 %s960_s11, 4  ;;  %s51_s30 = int_to_ptr.vmem [resolvable:$true] %s50_s30  ;;  %s79_s12 = int_to_ptr.vmem [resolvable:$true] %s78_s12 }
  0x26   :  { %s872_s13 = scalar_lea.vmem %s51_s30, 1024  ;;  %p877_p2 = scmp.lt.s32.totalorder %s51_s30, %s51_s30 }
  0x27   :  { %p873_p1 = scmp.ne.s32.totalorder %s51_s30, %s872_s13  ;;  %p878_p3 = scmp.lt.s32.totalorder %s872_s13, %s872_s13 }
  0x29   :  { %p879_p4 = por %p878_p3, %p877_p2 }
  0x2b   :  { %p880_p5 = pnand %p879_p4, %p873_p1 }
  0x2d   :  { %883 = shalt.err (!%p880_p5)
}
  0x2e   :  { %56 = dma.hbm_to_vmem [thread:$0]  %s1108_s3, 1024, %s51_s30, [#allocation6], %s955_s16, %s955_s16, %s956_s17  }
  0x2f   :  { %s892_s0 = scalar_lea.vmem %s79_s12, 1024  ;;  %p897_p7 = scmp.lt.s32.totalorder %s79_s12, %s79_s12 }
  0x30   :  { %p893_p6 = scmp.ne.s32.totalorder %s79_s12, %s892_s0  ;;  %p898_p8 = scmp.lt.s32.totalorder %s892_s0, %s892_s0 }
  0x32   :  { %p899_p9 = por %p898_p8, %p897_p7 }
  0x34   :  { %p900_p10 = pnand %p899_p9, %p893_p6 }
  0x36   :  { %903 = shalt.err (!%p900_p10)
}
  0x37   :  { %84 = dma.hbm_to_vmem [thread:$0]  %s1112_s7, 1024, %s79_s12, [#allocation9], %s955_s16, %s955_s16, %s956_s17  }
  0x38   :  { %944 = dma.done.wait [#allocation3], 128  }
  0x39   :  { %945 = vsyncadd [#allocation3], 4294967168 }
  0x3a   :  { %946 = dma.done.wait [#allocation6], 2048  }
  0x3b   :  { %947 = vsyncadd [#allocation6], 4294965248 }
  0x3c   :  { %948 = dma.done.wait [#allocation9], 2048  }
  0x3d   :  { %949 = vsyncadd [#allocation9], 4294965248  ;;  %v961_v0 = vmov 0.0   ;;  %vm962_vm0 = vmmov 0   ;;  %v764_v1 = vld [vmem:[#allocation5 + $0x38] sm:$0xff]   ;;  %v765_v2 = vld [vmem:[#allocation5 + $0x30] sm:$0xff]  }
  0x3e   :  { %673 = vmatprep.subr.bf16.mxu0 %v961_v0  ;;  %689 = vmatprep.mubr.msk.bf16.mxu0 %vm962_vm0, %v961_v0  ;;  %v766_v3 = vld [vmem:[#allocation5 + $0x28] sm:$0xff]   ;;  %v772_v4 = vld [vmem:[#allocation7 + $0x38] sm:$0xff]   ;;  %v767_v5 = vld [vmem:[#allocation5 + $0x20] sm:$0xff]   ;;  %s963_s19 = smov [#allocation12]  }
  0x3f   :  { %693 = vmatprep.subr.bf16.mxu1 %v961_v0  ;;  %709 = vmatprep.mubr.msk.bf16.mxu1 %vm962_vm0, %v961_v0  ;;  %v773_v6 = vld [vmem:[#allocation7 + $0x30] sm:$0xff]   ;;  %v768_v7 = vld [vmem:[#allocation5 + $0x18] sm:$0xff]   ;;  %v774_v8 = vld [vmem:[#allocation7 + $0x28] sm:$0xff]   ;;  %s584_s20 = sshll.u32 %s963_s19, 4  ;;  %s585_s20 = int_to_ptr.vmem [resolvable:$true] %s584_s20 }
  0x40   :  { %674 = vmatpush3.bf16.msra.mxu0 %v764_v1  ;;  %694 = vmatpush3.bf16.msra.mxu1 %v772_v4  ;;  %v769_v9 = vld [vmem:[#allocation5 + $0x10] sm:$0xff]   ;;  %v775_v10 = vld [vmem:[#allocation7 + $0x20] sm:$0xff]   ;;  %v770_v11 = vld [vmem:[#allocation5 + $0x8] sm:$0xff]   ;;  %s904_s21 = scalar_lea.vmem %s585_s20, 128  ;;  %p909_p12 = scmp.lt.s32.totalorder %s585_s20, %s585_s20 }
  0x41   :  { %675 = vmatprep.subr.bf16.mxu0 %v961_v0  ;;  %695 = vmatprep.subr.bf16.mxu1 %v961_v0  ;;  %v776_v12 = vld [vmem:[#allocation7 + $0x18] sm:$0xff]   ;;  %v771_v13 = vld [vmem:[#allocation5] sm:$0xff]   ;;  %v777_v15 = vld [vmem:[#allocation7 + $0x10] sm:$0xff]   ;;  %p905_p11 = scmp.ne.s32.totalorder %s585_s20, %s904_s21  ;;  %p910_p13 = scmp.lt.s32.totalorder %s904_s21, %s904_s21 }
  0x42   :  { %v103_v14 = vld [vmem:[#allocation2] sm:$0xff]  ;;  %v778_v17 = vld [vmem:[#allocation7 + $0x8] sm:$0xff]   ;;  %v779_v18 = vld [vmem:[#allocation7] sm:$0xff]  }
  0x43   :  { %v104_v16 = vpack.c.bf16 %v103_v14, %v103_v14  ;;  %v599_v19 = vld [vmem:[%s1107_s2] ss:$0 sm:$0xff]  ;;  %v781_v28 = vld [vmem:[#allocation8 + $0x30] sm:$0xff]   ;;  %v782_v29 = vld [vmem:[#allocation8 + $0x28] sm:$0xff]   ;;  %p911_p0 = por %p910_p13, %p909_p12 }
  0x44   :  { %676 = vmatpush3.bf16.msra.mxu0 %v765_v2  ;;  %696 = vmatpush3.bf16.msra.mxu1 %v773_v6  ;;  %v780_v27 = vld [vmem:[#allocation8 + $0x38] sm:$0xff]   ;;  %v783_v30 = vld [vmem:[#allocation8 + $0x20] sm:$0xff]   ;;  %v785_v32 = vld [vmem:[#allocation8 + $0x10] sm:$0xff]  }
  0x45   :  { %677 = vmatprep.subr.bf16.mxu0 %v961_v0  ;;  %697 = vmatprep.subr.bf16.mxu1 %v961_v0  ;;  %v784_v31 = vld [vmem:[#allocation8 + $0x18] sm:$0xff]   ;;  %v786_v33 = vld [vmem:[#allocation8 + $0x8] sm:$0xff]   ;;  %v787_v34 = vld [vmem:[#allocation8] sm:$0xff]   ;;  %p912_p1 = pnand %p911_p0, %p905_p11 }
  0x46   :  { %v788_v35 = vld [vmem:[#allocation10 + $0x38] sm:$0xff]   ;;  %v789_v36 = vld [vmem:[#allocation10 + $0x30] sm:$0xff]   ;;  %v790_v37 = vld [vmem:[#allocation10 + $0x28] sm:$0xff]  }
  0x47   :  { %v791_v38 = vld [vmem:[#allocation10 + $0x20] sm:$0xff]   ;;  %v792_v39 = vld [vmem:[#allocation10 + $0x18] sm:$0xff]   ;;  %v793_v40 = vld [vmem:[#allocation10 + $0x10] sm:$0xff]  }
  0x48   :  { %678 = vmatpush3.bf16.msra.mxu0 %v766_v3  ;;  %698 = vmatpush3.bf16.msra.mxu1 %v774_v8  ;;  %v608_v41 = vld [vmem:[%s1109_s4] ss:$0 sm:$0xff]  ;;  %v794_v52 = vld [vmem:[#allocation10 + $0x8] sm:$0xff]   ;;  %v795_v53 = vld [vmem:[#allocation10] sm:$0xff]  }
  0x49   :  { %679 = vmatprep.subr.bf16.mxu0 %v961_v0  ;;  %699 = vmatprep.subr.bf16.mxu1 %v961_v0  ;;  %v618_v54 = vld [vmem:[%s1111_s6] ss:$0 sm:$0xff] }
  0x4c   :  { %680 = vmatpush3.bf16.msra.mxu0 %v767_v5  ;;  %700 = vmatpush3.bf16.msra.mxu1 %v775_v10 }
  0x4d   :  { %681 = vmatprep.subr.bf16.mxu0 %v961_v0  ;;  %701 = vmatprep.subr.bf16.mxu1 %v961_v0 }
  0x50   :  { %682 = vmatpush3.bf16.msra.mxu0 %v768_v7  ;;  %702 = vmatpush3.bf16.msra.mxu1 %v776_v12 }
  0x51   :  { %683 = vmatprep.subr.bf16.mxu0 %v961_v0  ;;  %703 = vmatprep.subr.bf16.mxu1 %v961_v0 }
  0x54   :  { %684 = vmatpush3.bf16.msra.mxu0 %v769_v9  ;;  %704 = vmatpush3.bf16.msra.mxu1 %v777_v15 }
  0x55   :  { %685 = vmatprep.subr.bf16.mxu0 %v961_v0  ;;  %705 = vmatprep.subr.bf16.mxu1 %v961_v0 }
  0x58   :  { %686 = vmatpush3.bf16.msra.mxu0 %v770_v11  ;;  %706 = vmatpush3.bf16.msra.mxu1 %v778_v17 }
  0x59   :  { %687 = vmatprep.subr.bf16.mxu0 %v961_v0  ;;  %707 = vmatprep.subr.bf16.mxu1 %v961_v0 }
  0x5c   :  { %688 = vmatpush3.bf16.msra.mxu0 %v771_v13  ;;  %708 = vmatpush3.bf16.msra.mxu1 %v779_v18 }
  0x5d   :  { %713 = vmatprep.subr.bf16.mxu0 %v961_v0  ;;  %733 = vmatprep.subr.bf16.mxu1 %v961_v0 }
  0x5f   :  { %690 = vmatmul.mubr.bf16.vlgmr.msra.gmra.mxu0 %v104_v16 }
  0x60   :  { %729 = vmatprep.mubr.msk.bf16.mxu0 %vm962_vm0, %v961_v0  ;;  %714 = vmatpush3.bf16.msra.mxu0 %v780_v27 }
  0x61   :  { %715 = vmatprep.subr.bf16.mxu0 %v961_v0 }
  0x64   :  { %716 = vmatpush3.bf16.msra.mxu0 %v781_v28 }
  0x65   :  { %717 = vmatprep.subr.bf16.mxu0 %v961_v0 }
  0x68   :  { %718 = vmatpush3.bf16.msra.mxu0 %v782_v29 }
  0x69   :  { %719 = vmatprep.subr.bf16.mxu0 %v961_v0 }
  0x6c   :  { %720 = vmatpush3.bf16.msra.mxu0 %v783_v30 }
  0x6d   :  { %721 = vmatprep.subr.bf16.mxu0 %v961_v0 }
  0x70   :  { %722 = vmatpush3.bf16.msra.mxu0 %v784_v31 }
  0x71   :  { %723 = vmatprep.subr.bf16.mxu0 %v961_v0 }
  0x74   :  { %724 = vmatpush3.bf16.msra.mxu0 %v785_v32 }
  0x75   :  { %725 = vmatprep.subr.bf16.mxu0 %v961_v0 }
  0x78   :  { %726 = vmatpush3.bf16.msra.mxu0 %v786_v33 }
  0x79   :  { %727 = vmatprep.subr.bf16.mxu0 %v961_v0 }
  0x7c   :  { %728 = vmatpush3.bf16.msra.mxu0 %v787_v34 }
 0x11f   :  { %v210_v20 = vpop.f32.mrf.mxu0 }
 0x120   :  { %v211_v21 = vadd.f32 %v599_v19, %v210_v20 }
 0x121   :  { %v691_v22 = vpop.f32.mrf.mxu0 }
 0x122   :  { %v216_v23 = vmax.f32 %v211_v21, 0.0 }
 0x123   :  { %v213_v24 = vpop.f32.mrf.mxu0 }
 0x124   :  { %v217_v25 = vpack.c.bf16 %v216_v23, %v216_v23 }
 0x125   :  { %v692_v26 = vpop.f32.mrf.mxu0 }
 0x126   :  { %710 = vmatmul.mubr.bf16.vlgmr.msra.gmra.mxu1 %v217_v25 }
 0x127   :  { %749 = vmatprep.mubr.msk.bf16.mxu1 %vm962_vm0, %v961_v0  ;;  %734 = vmatpush3.bf16.msra.mxu1 %v788_v35 }
 0x128   :  { %735 = vmatprep.subr.bf16.mxu1 %v961_v0 }
 0x12b   :  { %736 = vmatpush3.bf16.msra.mxu1 %v789_v36 }
 0x12c   :  { %737 = vmatprep.subr.bf16.mxu1 %v961_v0 }
 0x12f   :  { %738 = vmatpush3.bf16.msra.mxu1 %v790_v37 }
 0x130   :  { %739 = vmatprep.subr.bf16.mxu1 %v961_v0 }
 0x133   :  { %740 = vmatpush3.bf16.msra.mxu1 %v791_v38 }
 0x134   :  { %741 = vmatprep.subr.bf16.mxu1 %v961_v0 }
 0x137   :  { %742 = vmatpush3.bf16.msra.mxu1 %v792_v39 }
 0x138   :  { %743 = vmatprep.subr.bf16.mxu1 %v961_v0 }
 0x13b   :  { %744 = vmatpush3.bf16.msra.mxu1 %v793_v40 }
 0x13c   :  { %745 = vmatprep.subr.bf16.mxu1 %v961_v0 }
 0x13f   :  { %746 = vmatpush3.bf16.msra.mxu1 %v794_v52 }
 0x140   :  { %747 = vmatprep.subr.bf16.mxu1 %v961_v0 }
 0x143   :  { %748 = vmatpush3.bf16.msra.mxu1 %v795_v53 }
 0x1e6   :  { %v323_v42 = vpop.f32.mrf.mxu1 }
 0x1e7   :  { %v324_v43 = vadd.f32 %v608_v41, %v323_v42 }
 0x1e8   :  { %v711_v44 = vpop.f32.mrf.mxu1 }
 0x1e9   :  { %v617_v45 = vmul.f32 -1.442695, %v324_v43 }
 0x1ea   :  { %v326_v46 = vpop.f32.mrf.mxu1 }
 0x1eb   :  { %796 = vpow2.f32 %v617_v45 }
 0x1ec   :  { %v712_v47 = vpop.f32.mrf.mxu1 }
 0x1f8   :  { %v797_v48 = vpop.eup %796 }
 0x1f9   :  { %v332_v49 = vadd.f32 1.0, %v797_v48 }
 0x1fb   :  { %798 = vrcp.f32 %v332_v49 }
 0x208   :  { %v799_v50 = vpop.eup %798 }
 0x209   :  { %335 = vst [vmem:[#allocation12] sm:$0xff] %v799_v50  ;;  %v336_v51 = vpack.c.bf16 %v799_v50, %v799_v50 }
 0x20b   :  { %730 = vmatmul.mubr.bf16.vlgmr.msra.gmra.mxu0 %v336_v51 }
 0x2cb   :  { %v442_v55 = vpop.f32.mrf.mxu0 }
 0x2cc   :  { %v443_v56 = vadd.f32 %v618_v54, %v442_v55 }
 0x2cd   :  { %v731_v57 = vpop.f32.mrf.mxu0 }
 0x2ce   :  { %v448_v58 = vmax.f32 %v443_v56, 0.0 }
 0x2cf   :  { %v445_v59 = vpop.f32.mrf.mxu0 }
 0x2d0   :  { %v449_v60 = vpack.c.bf16 %v448_v58, %v448_v58 }
 0x2d1   :  { %v732_v61 = vpop.f32.mrf.mxu0 }
 0x2d2   :  { %750 = vmatmul.mubr.bf16.vlgmr.msra.gmra.mxu1 %v449_v60 }
 0x2d3   :  { %915 = shalt.err (!%p912_p1)
}
 0x2d4   :  { %587 = dma.vmem_to_hbm [thread:$0]  %s585_s20, 128, %s1115_s10, [#allocation13]   ;;  %v627_v62 = vld [vmem:[%s1113_s8] ss:$0 sm:$0xff] }
 0x2d5   :  { %s964_s25 = smov [#allocation11]  }
 0x2d6   :  { %s574_s26 = sshll.u32 %s964_s25, 4  ;;  %s575_s26 = int_to_ptr.vmem [resolvable:$true] %s574_s26 }
 0x2d7   :  { %s924_s10 = scalar_lea.vmem %s575_s26, 128  ;;  %p929_p3 = scmp.lt.s32.totalorder %s575_s26, %s575_s26 }
 0x2d8   :  { %p925_p2 = scmp.ne.s32.totalorder %s575_s26, %s924_s10  ;;  %p930_p4 = scmp.lt.s32.totalorder %s924_s10, %s924_s10 }
 0x2da   :  { %p931_p5 = por %p930_p4, %p929_p3 }
 0x2dc   :  { %p932_p6 = pnand %p931_p5, %p925_p2 }
 0x392   :  { %v555_v63 = vpop.f32.mrf.mxu1 }
 0x393   :  { %v556_v0 = vadd.f32 %v627_v62, %v555_v63 }
 0x394   :  { %v751_v1 = vpop.f32.mrf.mxu1 }
 0x395   :  { %v636_v2 = vmul.f32 -1.442695, %v556_v0 }
 0x396   :  { %v558_v3 = vpop.f32.mrf.mxu1 }
 0x397   :  { %800 = vpow2.f32 %v636_v2 }
 0x398   :  { %v752_v4 = vpop.f32.mrf.mxu1 }
 0x3a4   :  { %v801_v5 = vpop.eup %800 }
 0x3a5   :  { %v564_v6 = vadd.f32 1.0, %v801_v5 }
 0x3a7   :  { %802 = vrcp.f32 %v564_v6 }
 0x3b4   :  { %v803_v7 = vpop.eup %802 }
 0x3b5   :  { %567 = vst [vmem:[#allocation11] sm:$0xff] %v803_v7 }
 0x3b6   :  { %935 = shalt.err (!%p932_p6)
}
 0x3b7   :  { %577 = dma.vmem_to_hbm [thread:$0]  %s575_s26, 128, %s1114_s9, [#allocation4]  }
 0x3b8   :  { %950 = dma.done.wait [#allocation4], 128  }
 0x3b9   :  { %951 = vsyncadd [#allocation4], 4294967168 }
 0x3ba   :  { %952 = dma.done.wait [#allocation13], 128  }
 0x3bb   :  { %953 = vsyncadd [#allocation13], 4294967168 }
 0x3bc   :  { %594 = vsyncpa [#allocation3], 1 }
 0x3bd   :  { %595 = vsyncpa [#allocation6], 1 }
 0x3be   :  { %596 = vsyncpa [#allocation9], 1 }
 0x3bf   :  { %597 = vsyncpa [#allocation4], 1 }
 0x3c0   :  { %598 = vsyncpa [#allocation13], 1 }

</bundles_post_ra>
